<compile_context>
chip_gen: v5e
topology: v5e:2x2
jax: 0.10.0
libtpu: 0.0.40
codegen_flags: <defaults>
</compile_context>

<pallas_src>
import jax
import jax.numpy as jnp
from jax.experimental import pallas as pl
from jax.experimental.pallas import tpu as pltpu


def _rpl_identity_kernel(x_ref, o_ref):
    # x_ref / o_ref: (tb, D) tiles.  C == D because the prototypes are I_D.
    x = x_ref[...]
    # ||x_b||^2 : cross-lane reduce on the XLU (separate slot from the VPU work).
    s = jnp.sum(x * x, axis=-1, keepdims=True)            # (tb, 1)
    # Identity prototypes:  d2[b, j] = ||x_b||^2 + 1 - 2 * x[b, j]
    d2 = (s + 1.0) - 2.0 * x                               # (tb, D)
    d2 = jnp.maximum(d2, 0.0)                              # guard fp round-off / padded rows
    o_ref[...] = -jnp.sqrt(d2)


def _round_up8(n):
    return max(8, ((n + 7) // 8) * 8)


def _choose_batch_tile(B, D):
    """Pick a batch tile sized by bytes, VMEM-capped, and >=2 grid steps when possible."""
    bytes_per_row = D * 4
    target_block_bytes = 2 << 20          # ~2 MiB per block -> near HBM roofline
    vmem_budget_bytes = 24 << 20          # for 2x(in)+2x(out) double-buffered blocks

    tb = max(8, (target_block_bytes // bytes_per_row) // 8 * 8)
    tb_vmem_cap = max(8, (vmem_budget_bytes // (4 * bytes_per_row)) // 8 * 8)
    tb = min(tb, tb_vmem_cap)

    # Never larger than the (sublane-rounded) batch itself.
    tb = min(tb, _round_up8(B))

    # Keep at least 2 grid steps when the batch allows it, so the "parallel"
    # axis can actually shard across both TensorCores on v7x.
    if tb >= B and B > 8:
        tb = _round_up8((B + 1) // 2)

    return tb


def radial_prediction_layer(x):
    """x: (B, D) float32 -> (B, D) float32 (prototypes are the fixed DxD identity)."""
    B, D = x.shape
    tb = _choose_batch_tile(B, D)
    grid = (pl.cdiv(B, tb),)

    block_bytes = tb * D * 4
    # Enough for double-buffered in + out blocks plus slack; capped well under
    # v7x's 64 MiB physical VMEM per TensorCore.
    vmem_limit = int(min(max(6 * block_bytes, 16 << 20), 48 << 20))

    return pl.pallas_call(
        _rpl_identity_kernel,
        out_shape=jax.ShapeDtypeStruct((B, D), x.dtype),
        grid_spec=pltpu.PrefetchScalarGridSpec(
            num_scalar_prefetch=0,
            grid=grid,
            in_specs=[pl.BlockSpec((tb, D), lambda i: (i, 0))],
            out_specs=pl.BlockSpec((tb, D), lambda i: (i, 0)),
        ),
        compiler_params=pltpu.CompilerParams(
            # Batch tiles are independent -> parallel (2x on v7x's two TCs,
            # neutral on single-TC v5e/v6e).
            dimension_semantics=("parallel",),
            vmem_limit_bytes=vmem_limit,
        ),
    )(x)


def radial_prediction_layer_ref(x):
    # Direct translation of the PyTorch forward (with explicit identity
    # prototypes) for correctness checking.
    D = x.shape[1]
    prototypes = jnp.eye(D, dtype=x.dtype)
    diff = x[:, None, :] - prototypes[None, :, :]
    return -jnp.sqrt(jnp.sum(diff * diff, axis=2))


if __name__ == "__main__":
    in_features = 32   # D (prototypes are the DxD identity, so C == D)
    out_features = 32  # unused by the forward pass, kept for module parity
    batch = 8

    key = jax.random.PRNGKey(0)
    x = jax.random.normal(key, (batch, in_features), dtype=jnp.float32)

    out = jax.block_until_ready(radial_prediction_layer(x))
    ref = radial_prediction_layer_ref(x)

    assert out.shape == (batch, in_features)
    assert jnp.allclose(out, ref, atol=1e-5, rtol=1e-5), "mismatch vs reference"

    print("KERNEL_OK")
</pallas_src>

<mosaic_0001>
module attributes {stable_mosaic.version = 11 : i64} {
  func.func @_rpl_identity_kernel(%arg0: i32, %arg1: memref<8x32xf32, #tpu.memory_space<vmem>>, %arg2: memref<8x32xf32, #tpu.memory_space<vmem>>) attributes {dimension_semantics = [#tpu.dimension_semantics<parallel>], iteration_bounds = array<i64: 1>, scalar_prefetch = 0 : i64, scratch_operands = 0 : i64, tpu.core_type = #tpu.core_type<tc>, window_params = [{transform_indices = @transform_0, window_bounds = array<i64: 8, 32>}, {transform_indices = @transform_1, window_bounds = array<i64: 8, 32>}]} {
    %c0 = arith.constant 0 : index
    %c0_0 = arith.constant 0 : index
    %0 = vector.load %arg1[%c0, %c0_0] : memref<8x32xf32, #tpu.memory_space<vmem>>, vector<8x32xf32>
    %1 = arith.mulf %0, %0 : vector<8x32xf32>
    %cst = arith.constant dense<0.000000e+00> : vector<8xf32>
    %2 = vector.multi_reduction <add>, %1, %cst [1] : vector<8x32xf32> to vector<8xf32>
    %3 = vector.shape_cast %2 : vector<8xf32> to vector<8x1xf32>
    %cst_1 = arith.constant 1.000000e+00 : f32
    %4 = vector.broadcast %cst_1 : f32 to vector<8x1xf32>
    %5 = arith.addf %3, %4 : vector<8x1xf32>
    %cst_2 = arith.constant 2.000000e+00 : f32
    %6 = vector.broadcast %cst_2 : f32 to vector<8x32xf32>
    %7 = arith.mulf %6, %0 : vector<8x32xf32>
    %8 = vector.broadcast %5 : vector<8x1xf32> to vector<8x32xf32>
    %9 = arith.subf %8, %7 : vector<8x32xf32>
    %cst_3 = arith.constant 0.000000e+00 : f32
    %10 = vector.broadcast %cst_3 : f32 to vector<8x32xf32>
    %11 = arith.maximumf %9, %10 : vector<8x32xf32>
    %12 = math.sqrt %11 : vector<8x32xf32>
    %cst_4 = arith.constant 0.000000e+00 : f32
    %13 = vector.broadcast %cst_4 : f32 to vector<8x32xf32>
    %14 = arith.subf %13, %12 : vector<8x32xf32>
    %c0_5 = arith.constant 0 : index
    %c0_6 = arith.constant 0 : index
    %15 = vector.load %arg2[%c0_5, %c0_6] : memref<8x32xf32, #tpu.memory_space<vmem>>, vector<8x32xf32>
    tpu.vector_store %arg2[%c0_5, %c0_6], %14 {strides = array<i32>} : memref<8x32xf32, #tpu.memory_space<vmem>>, vector<8x32xf32>,
    return
  }
  func.func @transform_0(%arg0: i32) -> (i32, i32) {
    %c0_i32 = arith.constant 0 : i32
    %c0_i32_0 = arith.constant 0 : i32
    return %arg0, %c0_i32 : i32, i32
  }
  func.func @transform_1(%arg0: i32) -> (i32, i32) {
    %c0_i32 = arith.constant 0 : i32
    %c0_i32_0 = arith.constant 0 : i32
    return %arg0, %c0_i32 : i32, i32
  }
}

</mosaic_0001>

<bundles_post_ra>
// kernel: tpu_custom_call.1
= control target key start
LH: loop header
LB: loop body
LE: loop exit
PB: predicated region body
PF: predicated region fallthrough
CT: control target
= control target key end

     0   :  { %6 = vsyncpa [#allocation3], 0  ;;  %s140_s0 = inlined_call_operand.hbm [shape: f32[8,32], index: 0, kind: input, shape index: {}]   ;;  %s141_s1 = inlined_call_operand.hbm [shape: f32[8,32], index: 1, kind: output, shape index: {}]  }
   0x1   :  { %7 = vsyncpa [#allocation4], 0  ;;  %s13_s8 = sshll.u32 %s140_s0, 4  ;;  %s120_s9 = smov [#allocation2]   ;;  %s14_s8 = int_to_ptr.hbm [resolvable:$true] %s13_s8 }
   0x2   :  { %s15_s10 = sshll.u32 %s120_s9, 4  ;;  %s16_s10 = int_to_ptr.vmem [resolvable:$true] %s15_s10 }
   0x3   :  { %18 = dma.hbm_to_vmem [thread:$0]  %s14_s8, 128, %s16_s10, [#allocation3]  }
   0x4   :  { %116 = dma.done.wait [#allocation3], 128  }
   0x5   :  { %117 = vsyncadd [#allocation3], 4294967168  ;;  %v23_v0 = vld [vmem:[#allocation2] sm:$0xff]  ;;  %vm25_vm0 = vcmask 261120   ;;  %s121_s0 = smov [#allocation5]   ;;  %s54_s14 = sshll.u32 %s141_s1, 4  ;;  %s55_s14 = int_to_ptr.hbm [resolvable:$true] %s54_s14 }
   0x6   :  { %v24_v1 = vmul.f32 %v23_v0, %v23_v0  ;;  %v30_v3 = vmul.f32 2.0, %v23_v0  ;;  %s52_s11 = sshll.u32 %s121_s0, 4  ;;  %s53_s11 = int_to_ptr.vmem [resolvable:$true] %s52_s11 }
   0x8   :  { %v26_v2 = vsel %vm25_vm0, %v24_v1, 0.0 }
   0x9   :  { %27 = vadd.xlane.f32.xlu0 %v26_v2 }
  0x7c   :  { %v28_v4 = vpop.xlane.xlu0 %27 }
  0x7d   :  { %v29_v5 = vadd.f32 1.0, %v28_v4 }
  0x7f   :  { %v31_v6 = vsub.f32 %v29_v5, %v30_v3 }
  0x81   :  { %v32_v7 = vmax.f32 %v31_v6, 0.0 }
  0x83   :  { %66 = vrsqrt.f32 %v32_v7  ;;  %vm40_vm1 = vcmp.eq.f32.partialorder %v32_v7, inf  ;;  %v43_v15 = vand.u32 2147483648, %v32_v7  ;;  %vm42_vm2 = vcmp.eq.f32.partialorder %v32_v7, 0.0 }
  0x89   :  { %v67_v8 = vpop.eup %66 }
  0x8a   :  { %v34_v9 = vmul.f32 %v67_v8, %v32_v7 }
  0x8c   :  { %v35_v10 = vmul.f32 %v67_v8, %v34_v9 }
  0x8e   :  { %v36_v11 = vmul.f32 0.5, %v35_v10 }
  0x90   :  { %v37_v12 = vsub.f32 1.5, %v36_v11 }
  0x92   :  { %v38_v13 = vmul.f32 %v67_v8, %v37_v12 }
  0x94   :  { %v39_v14 = vmul.f32 %v38_v13, %v32_v7 }
  0x96   :  { %v41_v16 = vsel %vm40_vm1, %v32_v7, %v39_v14 }
  0x97   :  { %v44_v17 = vsel %vm42_vm2, %v43_v15, %v41_v16 }
  0x98   :  { %v45_v18 = vsub.f32 0.0, %v44_v17 }
  0x9a   :  { %46 = vst.msk [vmem:[#allocation5] sm:$0xff] %vm25_vm0, %v45_v18 }
  0x9b   :  { %57 = dma.vmem_to_hbm [thread:$0]  %s53_s11, 128, %s55_s14, [#allocation4]  }
  0x9c   :  { %118 = dma.done.wait [#allocation4], 128  }
  0x9d   :  { %119 = vsyncadd [#allocation4], 4294967168 }
  0x9e   :  { %62 = vsyncpa [#allocation3], 1 }
  0x9f   :  { %63 = vsyncpa [#allocation4], 1 }

</bundles_post_ra>
